<compile_context>
chip_gen: v6e
topology: v6e:2x2x1
jax: 0.10.0
libtpu: 0.0.40
codegen_flags: <defaults>
</compile_context>

<pallas_src>
import jax
import jax.numpy as jnp
import numpy as np
from jax.experimental import pallas as pl
from jax.experimental.pallas import tpu as pltpu


# ----------------------------------------------------------------------------- Pallas kernel ---
def _make_head_kernel(Bb, T):
    """Kernel for one (2d, Bb*T) slab: folded head convs + per-batch log-softmax over T."""

    def kernel(x_ref, wa_ref, ba_ref, wb_ref, o_ref):
        # Conv1d(2d, d, 1) with the residual-block constant already folded into ba -> ReLU.
        y = jnp.dot(wa_ref[...], x_ref[...], preferred_element_type=jnp.float32) + ba_ref[...]
        y = jnp.maximum(y, 0.0).astype(jnp.bfloat16)
        # Conv1d(d, out, 1); its bias is dropped (constant along T -> cancels in log-softmax).
        z = jnp.dot(wb_ref[...], y, preferred_element_type=jnp.float32)      # (out, Bb*T) f32
        # LogSoftmax over dim=-1 of NCW == over T, per (batch, channel).  Batches occupy
        # contiguous length-T lane segments; use masked segmented reductions (no lane reshapes).
        if Bb == 1:
            m = jnp.max(z, axis=-1, keepdims=True)
            e = z - m
            o_ref[...] = e - jnp.log(jnp.sum(jnp.exp(e), axis=-1, keepdims=True))
        else:
            col = jax.lax.broadcasted_iota(jnp.int32, z.shape, 1)
            m = jnp.zeros_like(z)
            for b in range(Bb):                       # static unroll; Bb kept small by design
                seg = (col >= b * T) & (col < (b + 1) * T)
                mb = jnp.max(jnp.where(seg, z, -jnp.inf), axis=-1, keepdims=True)
                m = jnp.where(seg, mb, m)
            e = z - m
            p = jnp.exp(e)
            s = jnp.ones_like(z)
            for b in range(Bb):
                seg = (col >= b * T) & (col < (b + 1) * T)
                sb = jnp.sum(jnp.where(seg, p, 0.0), axis=-1, keepdims=True)
                s = jnp.where(seg, sb, s)
            o_ref[...] = e - jnp.log(s)

    return kernel


# --------------------------------------------------------------------------------- parameters ---
def init_params(key, *, hidden, out_channels, num_blocks, k):
    """Deterministic synthetic parameters with the shapes implied by the module's __init__."""
    d = hidden
    s = 0.1
    ks = jax.random.split(key, 11)
    return dict(
        # per block: [ln1_w, ln1_b, ln2_w, ln2_b, ln3_w, ln3_b]  (LayerNorm(1) -> scalars)
        ln=jax.random.normal(ks[0], (num_blocks, 6), jnp.float32) * s,
        w1=jax.random.normal(ks[1], (num_blocks, d, 2 * d), jnp.float32) * s,   # Conv1d(2d, d, 1)
        b1=jax.random.normal(ks[2], (num_blocks, d), jnp.float32) * s,
        w2=jax.random.normal(ks[3], (num_blocks, d, d, k), jnp.float32) * s,    # Conv1d(d, d, k)
        b2=jax.random.normal(ks[4], (num_blocks, d), jnp.float32) * s,
        w3=jax.random.normal(ks[5], (num_blocks, 2 * d, d), jnp.float32) * s,   # Conv1d(d, 2d, 1)
        b3=jax.random.normal(ks[6], (num_blocks, 2 * d), jnp.float32) * s,
        wa=jax.random.normal(ks[7], (d, 2 * d), jnp.float32) * s,               # Conv1d(2d, d, 1)
        ba=jax.random.normal(ks[8], (d,), jnp.float32) * s,
        wb=jax.random.normal(ks[9], (out_channels, d), jnp.float32) * s,        # Conv1d(d, out, 1)
        bb=jax.random.normal(ks[10], (out_channels,), jnp.float32) * s,
    )


def _fold_residual_blocks_into_bias(params):
    """Exact f32 fold: residual blocks -> const (2d,), then ba' = wa @ const + ba  (shape (d,))."""
    s3 = jnp.maximum(params["ln"][:, 5], 0.0)                               # relu(ln3_bias)
    deltas = s3[:, None] * jnp.sum(params["w3"], axis=2) + params["b3"]     # (nblk, 2d)
    const = jnp.sum(deltas, axis=0).astype(jnp.float32)                     # (2d,)
    return params["wa"].astype(jnp.float32) @ const + params["ba"].astype(jnp.float32)


def _pick_batch_block(B, T, lane_target=512):
    """Batches per grid step.  Prefer >=2 grid steps (v7x has 2 TensorCores) when each step can
    still present a lane width that is a multiple of 128; otherwise take the whole batch in one
    step (block == full array is always a legal BlockSpec, and it removes per-step overhead)."""
    divisors = [q for q in range(1, B + 1) if B % q == 0]
    ok = [q for q in divisors if q < B and (q * T) % 128 == 0 and q * T <= lane_target]
    if ok:
        return max(ok)
    ok_full = [q for q in divisors if (q * T) % 128 == 0 and q * T <= lane_target]
    if ok_full:
        return max(ok_full)
    return B


# ------------------------------------------------------------------------------------ wrapper ---
def bytenet_decoder_forward(x_ncw, params, *, dilations, k):
    del dilations, k  # only affect the dead (constant-folded) conv path; see header.
    B, C2, T = x_ncw.shape            # NCW input: channels == 2 * hidden_channels
    d = C2 // 2
    out_ch = params["wb"].shape[0]

    # Exact constant folds (f32, in the wrapper): residual blocks + first head bias; bb dropped.
    ba_f = _fold_residual_blocks_into_bias(params)[:, None]                 # (d, 1) f32

    # Batch folded into lanes: (B, C2, T) -> (C2, B*T), batch-major lane segments of length T.
    x_packed = jnp.transpose(x_ncw, (1, 0, 2)).reshape(C2, B * T).astype(jnp.bfloat16)
    wa = params["wa"].astype(jnp.bfloat16)                                  # (d, 2d)
    wb = params["wb"].astype(jnp.bfloat16)                                  # (out, d)

    Bb = _pick_batch_block(B, T)
    G = B // Bb
    NL = Bb * T                                                             # lanes per grid step

    # Generation-aware VMEM budget (v5e/v6e: 128 MiB physical, v7x: 64 MiB), with headroom.
    try:
        vmem_cap = int(pltpu.get_tpu_info().vmem_capacity_bytes)
    except Exception:
        vmem_cap = 64 * 2**20                                               # most conservative
    est = (2 * C2 * NL * 2 + 2 * out_ch * NL * 4          # double-buffered x / out blocks
           + (d * C2 + out_ch * d) * 2 + d * 4            # weights + folded bias
           + 4 * (d + out_ch) * NL * 4)                    # intermediates, generous
    vmem_limit = int(min(max(4 * est, 16 * 2**20), vmem_cap - 8 * 2**20))

    out_packed = pl.pallas_call(
        _make_head_kernel(Bb, T),
        out_shape=jax.ShapeDtypeStruct((out_ch, B * T), jnp.float32),
        grid=(G,),
        in_specs=[
            pl.BlockSpec((C2, NL), lambda g: (0, g)),      # x slab: lane-dense Bb*T columns
            pl.BlockSpec((d, C2), lambda g: (0, 0)),       # head conv A weight (out_c, in_c)
            pl.BlockSpec((d, 1), lambda g: (0, 0)),        # head conv A bias (const folded in)
            pl.BlockSpec((out_ch, d), lambda g: (0, 0)),   # head conv B weight (bias dropped)
        ],
        out_specs=pl.BlockSpec((out_ch, NL), lambda g: (0, g)),
        compiler_params=pltpu.CompilerParams(
            dimension_semantics=("parallel",),
            vmem_limit_bytes=vmem_limit,
        ),
    )(x_packed, wa, ba_f, wb)

    # Unpack lanes back to NCW: (out, B*T) -> (B, out, T).
    return out_packed.reshape(out_ch, B, T).transpose(1, 0, 2)


# ---------------------------------------------------------------- faithful pure-JAX reference ---
def _shift_down(x, shift):
    """Shift rows down along the T axis (second-to-last dim), zero-filling the top."""
    if shift == 0:
        return x
    t_axis = x.ndim - 2
    T = x.shape[t_axis]
    if shift >= T:
        return jnp.zeros_like(x)
    pad = jnp.zeros(x.shape[:t_axis] + (shift,) + x.shape[t_axis + 1:], x.dtype)
    kept = jax.lax.slice_in_dim(x, 0, T - shift, axis=t_axis)
    return jnp.concatenate([pad, kept], axis=t_axis)


def reference_forward(x_ncw, params, *, dilations, k):
    """Full faithful math of the PyTorch module (including its dead dilated-conv path and bb)."""
    hp = jax.lax.Precision.HIGHEST
    h = jnp.transpose(x_ncw, (0, 2, 1)).astype(jnp.float32)   # (B, T, 2d) channels-last
    for blk, dil in enumerate(dilations):
        res = h
        y = jnp.maximum(jnp.zeros_like(h) + params["ln"][blk, 1], 0.0)            # ln1 + relu1
        y = jnp.matmul(y, params["w1"][blk].T, precision=hp) + params["b1"][blk]  # conv1 (1x1)
        y = jnp.maximum(jnp.zeros_like(y) + params["ln"][blk, 3], 0.0)            # ln2 + relu2
        acc = jnp.zeros_like(y) + params["b2"][blk]                               # causal conv2
        for j in range(k):
            shift = (k - 1 - j) * dil
            acc = acc + jnp.matmul(_shift_down(y, shift), params["w2"][blk, :, :, j].T,
                                   precision=hp)
        y = jnp.maximum(jnp.zeros_like(acc) + params["ln"][blk, 5], 0.0)          # ln3 + relu3
        y = jnp.matmul(y, params["w3"][blk].T, precision=hp) + params["b3"][blk]  # conv3 (1x1)
        h = res + y
    y = jnp.matmul(h, params["wa"].T, precision=hp) + params["ba"]
    y = jnp.maximum(y, 0.0)
    y = jnp.matmul(y, params["wb"].T, precision=hp) + params["bb"]
    out = jax.nn.log_softmax(y, axis=1)        # over the length axis (dim=-1 of NCW)
    return jnp.transpose(out, (0, 2, 1))       # back to NCW


# --------------------------------------------------------------------------------------- main ---
if __name__ == "__main__":
    # Small synthetic configuration consistent with BytenetDecoder's __init__.
    hidden_channels = 32
    output_channels = 16
    masked_kernel_size = 3
    num_sets = 2
    set_size = 2
    max_dilation_rate = 4
    B, T = 2, 16

    # Dilation schedule exactly as the module builds it.
    dilations = []
    for _ in range(num_sets):
        rate = 1
        for _ in range(set_size):
            rate *= 2
            dilations.append(rate if rate <= max_dilation_rate else max_dilation_rate)

    key = jax.random.PRNGKey(0)
    kx, kparams = jax.random.split(key)
    params = init_params(kparams, hidden=hidden_channels, out_channels=output_channels,
                         num_blocks=len(dilations), k=masked_kernel_size)

    # NCW input: (batch, 2 * hidden_channels, length)
    x = jax.random.normal(kx, (B, 2 * hidden_channels, T), jnp.float32)

    out = bytenet_decoder_forward(x, params, dilations=dilations, k=masked_kernel_size)
    out = jax.block_until_ready(out)
    assert out.shape == (B, output_channels, T)

    # Tolerance accounts for the bf16 inputs to the two MXU matmuls (f32 accumulation).
    ref = reference_forward(x, params, dilations=dilations, k=masked_kernel_size)
    np.testing.assert_allclose(np.asarray(out), np.asarray(ref), atol=1e-2, rtol=1e-2)

    print("KERNEL_OK")
</pallas_src>

<mosaic_0001>
module attributes {stable_mosaic.version = 11 : i64} {
  func.func @kernel(%arg0: i32, %arg1: memref<64x32xbf16, #tpu.memory_space<vmem>>, %arg2: memref<32x64xbf16, #tpu.memory_space<vmem>>, %arg3: memref<32x1xf32, #tpu.memory_space<vmem>>, %arg4: memref<16x32xbf16, #tpu.memory_space<vmem>>, %arg5: memref<16x32xf32, #tpu.memory_space<vmem>>) attributes {dimension_semantics = [#tpu.dimension_semantics<parallel>], iteration_bounds = array<i64: 1>, scalar_prefetch = 0 : i64, scratch_operands = 0 : i64, tpu.core_type = #tpu.core_type<tc>, window_params = [{transform_indices = @transform_0, window_bounds = array<i64: 64, 32>}, {pipeline_mode = #tpu.pipeline_mode<synchronous>, transform_indices = @transform_1, window_bounds = array<i64: 32, 64>}, {pipeline_mode = #tpu.pipeline_mode<synchronous>, transform_indices = @transform_2, window_bounds = array<i64: 32, 1>}, {pipeline_mode = #tpu.pipeline_mode<synchronous>, transform_indices = @transform_3, window_bounds = array<i64: 16, 32>}, {transform_indices = @transform_4, window_bounds = array<i64: 16, 32>}]} {
    %c0 = arith.constant 0 : index
    %c0_0 = arith.constant 0 : index
    %0 = vector.load %arg2[%c0, %c0_0] : memref<32x64xbf16, #tpu.memory_space<vmem>>, vector<32x64xbf16>
    %c0_1 = arith.constant 0 : index
    %c0_2 = arith.constant 0 : index
    %1 = vector.load %arg1[%c0_1, %c0_2] : memref<64x32xbf16, #tpu.memory_space<vmem>>, vector<64x32xbf16>
    %cst = arith.constant dense<0.000000e+00> : vector<32x32xf32>
    %2 = tpu.matmul %0, %1, %cst {dimension_numbers = #tpu.dot_dimension_numbers<[1], [0], [0], [1], [0, 0, 1, 1], [], []>} : vector<32x64xbf16>, vector<64x32xbf16>, vector<32x32xf32> -> vector<32x32xf32>
    %c0_3 = arith.constant 0 : index
    %c0_4 = arith.constant 0 : index
    %3 = vector.load %arg3[%c0_3, %c0_4] : memref<32x1xf32, #tpu.memory_space<vmem>>, vector<32x1xf32>
    %4 = vector.broadcast %3 : vector<32x1xf32> to vector<32x32xf32>
    %5 = arith.addf %2, %4 : vector<32x32xf32>
    %cst_5 = arith.constant 0.000000e+00 : f32
    %6 = vector.broadcast %cst_5 : f32 to vector<32x32xf32>
    %7 = arith.maximumf %5, %6 : vector<32x32xf32>
    %8 = arith.truncf %7 : vector<32x32xf32> to vector<32x32xbf16>
    %c0_6 = arith.constant 0 : index
    %c0_7 = arith.constant 0 : index
    %9 = vector.load %arg4[%c0_6, %c0_7] : memref<16x32xbf16, #tpu.memory_space<vmem>>, vector<16x32xbf16>
    %cst_8 = arith.constant dense<0.000000e+00> : vector<16x32xf32>
    %10 = tpu.matmul %9, %8, %cst_8 {dimension_numbers = #tpu.dot_dimension_numbers<[1], [0], [0], [1], [0, 0, 1, 1], [], []>} : vector<16x32xbf16>, vector<32x32xbf16>, vector<16x32xf32> -> vector<16x32xf32>
    %11 = tpu.iota {dimensions = array<i32: 1>} : vector<16x32xi32>
    %cst_9 = arith.constant 0.000000e+00 : f32
    %12 = vector.broadcast %cst_9 : f32 to vector<16x32xf32>
    %c0_i32 = arith.constant 0 : i32
    %13 = vector.broadcast %c0_i32 : i32 to vector<16x32xi32>
    %14 = arith.cmpi sge, %11, %13 : vector<16x32xi32>
    %c16_i32 = arith.constant 16 : i32
    %15 = vector.broadcast %c16_i32 : i32 to vector<16x32xi32>
    %16 = arith.cmpi slt, %11, %15 : vector<16x32xi32>
    %17 = arith.andi %14, %16 : vector<16x32xi1>
    %cst_10 = arith.constant 0xFF800000 : f32
    %18 = vector.broadcast %cst_10 : f32 to vector<16x32xf32>
    %19 = arith.select %17, %10, %18 : vector<16x32xi1>, vector<16x32xf32>
    %cst_11 = arith.constant dense<0xFF800000> : vector<16xf32>
    %20 = vector.multi_reduction <maximumf>, %19, %cst_11 [1] : vector<16x32xf32> to vector<16xf32>
    %21 = vector.shape_cast %20 : vector<16xf32> to vector<16x1xf32>
    %22 = vector.shape_cast %21 : vector<16x1xf32> to vector<16x1xf32>
    %23 = vector.broadcast %22 : vector<16x1xf32> to vector<16x32xf32>
    %24 = arith.select %17, %23, %12 : vector<16x32xi1>, vector<16x32xf32>
    %c16_i32_12 = arith.constant 16 : i32
    %25 = vector.broadcast %c16_i32_12 : i32 to vector<16x32xi32>
    %26 = arith.cmpi sge, %11, %25 : vector<16x32xi32>
    %c32_i32 = arith.constant 32 : i32
    %27 = vector.broadcast %c32_i32 : i32 to vector<16x32xi32>
    %28 = arith.cmpi slt, %11, %27 : vector<16x32xi32>
    %29 = arith.andi %26, %28 : vector<16x32xi1>
    %cst_13 = arith.constant 0xFF800000 : f32
    %30 = vector.broadcast %cst_13 : f32 to vector<16x32xf32>
    %31 = arith.select %29, %10, %30 : vector<16x32xi1>, vector<16x32xf32>
    %cst_14 = arith.constant dense<0xFF800000> : vector<16xf32>
    %32 = vector.multi_reduction <maximumf>, %31, %cst_14 [1] : vector<16x32xf32> to vector<16xf32>
    %33 = vector.shape_cast %32 : vector<16xf32> to vector<16x1xf32>
    %34 = vector.shape_cast %33 : vector<16x1xf32> to vector<16x1xf32>
    %35 = vector.broadcast %34 : vector<16x1xf32> to vector<16x32xf32>
    %36 = arith.select %29, %35, %24 : vector<16x32xi1>, vector<16x32xf32>
    %37 = arith.subf %10, %36 : vector<16x32xf32>
    %38 = math.exp %37 : vector<16x32xf32>
    %cst_15 = arith.constant 1.000000e+00 : f32
    %39 = vector.broadcast %cst_15 : f32 to vector<16x32xf32>
    %c0_i32_16 = arith.constant 0 : i32
    %40 = vector.broadcast %c0_i32_16 : i32 to vector<16x32xi32>
    %41 = arith.cmpi sge, %11, %40 : vector<16x32xi32>
    %c16_i32_17 = arith.constant 16 : i32
    %42 = vector.broadcast %c16_i32_17 : i32 to vector<16x32xi32>
    %43 = arith.cmpi slt, %11, %42 : vector<16x32xi32>
    %44 = arith.andi %41, %43 : vector<16x32xi1>
    %cst_18 = arith.constant 0.000000e+00 : f32
    %45 = vector.broadcast %cst_18 : f32 to vector<16x32xf32>
    %46 = arith.select %44, %38, %45 : vector<16x32xi1>, vector<16x32xf32>
    %cst_19 = arith.constant dense<0.000000e+00> : vector<16xf32>
    %47 = vector.multi_reduction <add>, %46, %cst_19 [1] : vector<16x32xf32> to vector<16xf32>
    %48 = vector.shape_cast %47 : vector<16xf32> to vector<16x1xf32>
    %49 = vector.shape_cast %48 : vector<16x1xf32> to vector<16x1xf32>
    %50 = vector.broadcast %49 : vector<16x1xf32> to vector<16x32xf32>
    %51 = arith.select %44, %50, %39 : vector<16x32xi1>, vector<16x32xf32>
    %c16_i32_20 = arith.constant 16 : i32
    %52 = vector.broadcast %c16_i32_20 : i32 to vector<16x32xi32>
    %53 = arith.cmpi sge, %11, %52 : vector<16x32xi32>
    %c32_i32_21 = arith.constant 32 : i32
    %54 = vector.broadcast %c32_i32_21 : i32 to vector<16x32xi32>
    %55 = arith.cmpi slt, %11, %54 : vector<16x32xi32>
    %56 = arith.andi %53, %55 : vector<16x32xi1>
    %cst_22 = arith.constant 0.000000e+00 : f32
    %57 = vector.broadcast %cst_22 : f32 to vector<16x32xf32>
    %58 = arith.select %56, %38, %57 : vector<16x32xi1>, vector<16x32xf32>
    %cst_23 = arith.constant dense<0.000000e+00> : vector<16xf32>
    %59 = vector.multi_reduction <add>, %58, %cst_23 [1] : vector<16x32xf32> to vector<16xf32>
    %60 = vector.shape_cast %59 : vector<16xf32> to vector<16x1xf32>
    %61 = vector.shape_cast %60 : vector<16x1xf32> to vector<16x1xf32>
    %62 = vector.broadcast %61 : vector<16x1xf32> to vector<16x32xf32>
    %63 = arith.select %56, %62, %51 : vector<16x32xi1>, vector<16x32xf32>
    %64 = math.log %63 : vector<16x32xf32>
    %65 = arith.subf %37, %64 : vector<16x32xf32>
    %c0_24 = arith.constant 0 : index
    %c0_25 = arith.constant 0 : index
    %66 = vector.load %arg5[%c0_24, %c0_25] : memref<16x32xf32, #tpu.memory_space<vmem>>, vector<16x32xf32>
    tpu.vector_store %arg5[%c0_24, %c0_25], %65 {strides = array<i32>} : memref<16x32xf32, #tpu.memory_space<vmem>>, vector<16x32xf32>,
    return
  }
  func.func @transform_0(%arg0: i32) -> (i32, i32) {
    %c0_i32 = arith.constant 0 : i32
    %c0_i32_0 = arith.constant 0 : i32
    return %c0_i32, %arg0 : i32, i32
  }
  func.func @transform_1(%arg0: i32) -> (i32, i32) {
    %c0_i32 = arith.constant 0 : i32
    %c0_i32_0 = arith.constant 0 : i32
    %c0_i32_1 = arith.constant 0 : i32
    return %c0_i32, %c0_i32_0 : i32, i32
  }
  func.func @transform_2(%arg0: i32) -> (i32, i32) {
    %c0_i32 = arith.constant 0 : i32
    %c0_i32_0 = arith.constant 0 : i32
    %c0_i32_1 = arith.constant 0 : i32
    return %c0_i32, %c0_i32_0 : i32, i32
  }
  func.func @transform_3(%arg0: i32) -> (i32, i32) {
    %c0_i32 = arith.constant 0 : i32
    %c0_i32_0 = arith.constant 0 : i32
    %c0_i32_1 = arith.constant 0 : i32
    return %c0_i32, %c0_i32_0 : i32, i32
  }
  func.func @transform_4(%arg0: i32) -> (i32, i32) {
    %c0_i32 = arith.constant 0 : i32
    %c0_i32_0 = arith.constant 0 : i32
    return %c0_i32, %arg0 : i32, i32
  }
}

</mosaic_0001>

<bundles_post_ra>
// kernel: tpu_custom_call.1
= control target key start
LH: loop header
LB: loop body
LE: loop exit
PB: predicated region body
PF: predicated region fallthrough
CT: control target
= control target key end

     0   :  { %v365_v2 = vmov 0   ;;  %vm89_vm0 = vcmask 523264   ;;  %s473_s0 = inlined_call_operand.vmem [shape: bf16[64,32], index: 0, kind: input, shape index: {}]   ;;  %s474_s1 = inlined_call_operand.vmem [shape: bf16[32,64], index: 1, kind: input, shape index: {}]   ;;  %s475_s2 = inlined_call_operand.vmem [shape: f32[32,1], index: 2, kind: input, shape index: {}]   ;;  %s476_s3 = inlined_call_operand.vmem [shape: bf16[16,32], index: 3, kind: input, shape index: {}]   ;;  %s477_s4 = inlined_call_operand.hbm [shape: f32[16,32], index: 4, kind: output, shape index: {}]  }
   0x1   :  { %v328_v0 = vld [vmem:[%s473_s0 + $0x18] sm:$0xff]   ;;  %v329_v1 = vld [vmem:[%s473_s0 + $0x10] sm:$0xff]   ;;  %326 = vset.pattern.permute.xlu0 %v365_v2  ;;  %v330_v3 = vld [vmem:[%s473_s0 + $0x8] sm:$0xff]   ;;  %327 = vset.pattern.permute.xlu1 %v365_v2 }
   0x2   :  { %300 = vmatprep.subr.bf16.mxu0 %v328_v0  ;;  %v332_v4 = vld [vmem:[%s474_s1] sm:$0xff]   ;;  %v33_v5 = vld [vmem:[%s475_s2 + $0x10] sm:$0xff]  ;;  %v34_v8 = vld [vmem:[%s475_s2 + $0x18] sm:$0xff] }
   0x3   :  { %301 = vmatpush3.bf16.msra.mxu0 %v328_v0  ;;  %308 = vmatprep.mubr.msk.bf16.mxu0 %vm89_vm0, %v332_v4  ;;  %v31_v6 = vld [vmem:[%s475_s2] sm:$0xff] }
   0x4   :  { %302 = vmatprep.subr.bf16.mxu0 %v329_v1  ;;  %47 = vperm.xlu0 %326, %v33_v5   ;;  %v331_v7 = vld [vmem:[%s473_s0] sm:$0xff]  }
   0x5   :  { %37 = vperm.xlu1 %327, %v31_v6  }
   0x7   :  { %303 = vmatpush3.bf16.msra.mxu0 %v329_v1 }
   0x8   :  { %304 = vmatprep.subr.bf16.mxu0 %v330_v3 }
   0x9   :  { %9 = vsyncpa [#allocation3], 0  ;;  %v32_v9 = vld [vmem:[%s475_s2 + $0x8] sm:$0xff]  ;;  %52 = vperm.xlu0 %326, %v34_v8   ;;  %v366_v11 = vmov 0.0   ;;  %vm367_vm1 = vmmov 0   ;;  %v334_v30 = vld [vmem:[%s476_s3] sm:$0xff]   ;;  %v203_v31 = vlaneseq }
   0xa   :  { %42 = vperm.xlu1 %327, %v32_v9   ;;  %v333_v10 = vld [vmem:[%s474_s1 + $0x8] sm:$0xff]   ;;  %312 = vmatprep.subr.bf16.mxu1 %v366_v11  ;;  %vm158_vm2 = vcmask 261120   ;;  %s368_s2 = smov [#allocation2]  }
   0xb   :  { %305 = vmatpush3.bf16.msra.mxu0 %v330_v3  ;;  %316 = vmatprep.mubr.msk.bf16.mxu1 %vm367_vm1, %v366_v11  ;;  %v204_v32 = vand.u32 127, %v203_v31  ;;  %s270_s3 = sshll.u32 %s368_s2, 4  ;;  %s271_s3 = int_to_ptr.vmem [resolvable:$true] %s270_s3 }
   0xc   :  { %306 = vmatprep.subr.bf16.mxu0 %v331_v7  ;;  %s343_s9 = scalar_lea.vmem %s271_s3, 256  ;;  %p348_p1 = scmp.lt.s32.totalorder %s271_s3, %s271_s3 }
   0xd   :  { %vm218_vm3 = vcmp.ge.s32.totalorder %v204_v32, 16  ;;  %vm219_vm4 = vcmp.lt.s32.totalorder %v204_v32, 32  ;;  %vm206_vm5 = vcmp.lt.s32.totalorder %v204_v32, 16  ;;  %p344_p0 = scmp.ne.s32.totalorder %s271_s3, %s343_s9  ;;  %p349_p2 = scmp.lt.s32.totalorder %s343_s9, %s343_s9 }
   0xe   :  { %vm432_vm6 = vmand %vm218_vm3, %vm219_vm4 }
   0xf   :  { %307 = vmatpush3.bf16.msra.mxu0 %v331_v7  ;;  %p350_p3 = por %p349_p2, %p348_p1 }
  0x11   :  { %p351_p4 = pnand %p350_p3, %p344_p0 }
  0x12   :  { %309 = vmatmul.mubr.msk.bf16.vlgmr.msra.gmra.mxu0 %vm89_vm0, %v333_v10 }
  0x7f   :  { %v48_v12 = vpop.permute.xlu0 %47 }
  0x80   :  { %v38_v13 = vpop.permute.xlu1 %37 }
  0x84   :  { %v53_v17 = vpop.permute.xlu0 %52 }
  0x85   :  { %v43_v20 = vpop.permute.xlu1 %42 }
  0xd2   :  { %v310_v14 = vpop.f32.mrf.mxu0 }
  0xd3   :  { %v139_v16 = vadd.f32 %v310_v14, %v48_v12 }
  0xd4   :  { %v130_v15 = vpop.f32.mrf.mxu0 }
  0xd5   :  { %v147_v22 = vmax.f32 %v139_v16, 0.0  ;;  %v131_v23 = vadd.f32 %v130_v15, %v38_v13 }
  0xd6   :  { %v311_v18 = vpop.f32.mrf.mxu0 }
  0xd7   :  { %v142_v19 = vadd.f32 %v311_v18, %v53_v17  ;;  %v145_v28 = vmax.f32 %v131_v23, 0.0 }
  0xd8   :  { %v133_v21 = vpop.f32.mrf.mxu0 }
  0xd9   :  { %v148_v24 = vmax.f32 %v142_v19, 0.0  ;;  %v134_v25 = vadd.f32 %v133_v21, %v43_v20 }
  0xdb   :  { %v146_v26 = vmax.f32 %v134_v25, 0.0  ;;  %v150_v27 = vpack.c.bf16 %v148_v24, %v147_v22 }
  0xdd   :  { %313 = vmatpush3.bf16.msra.mxu1 %v150_v27  ;;  %v149_v29 = vpack.c.bf16 %v146_v26, %v145_v28 }
  0xde   :  { %314 = vmatprep.subr.bf16.mxu1 %v366_v11 }
  0xe1   :  { %315 = vmatpush3.bf16.msra.mxu1 %v149_v29 }
  0xe4   :  { %317 = vmatmul.mubr.msk.bf16.vlgmr.msra.gmra.mxu1 %vm158_vm2, %v334_v30 }
 0x1a4   :  { %v196_v33 = vpop.f32.mrf.mxu1 }
 0x1a5   :  { %v208_v35 = vsel %vm206_vm5, %v196_v33, -inf  ;;  %v221_v38 = vsel %vm432_vm6, %v196_v33, -inf }
 0x1a6   :  { %v318_v36 = vpop.f32.mrf.mxu1  ;;  %v210_v37 = vsel %vm158_vm2, %v208_v35, -inf  ;;  %v223_v42 = vsel %vm158_vm2, %v221_v38, -inf }
 0x1a7   :  { %211 = vmax.xlane.f32.xlu0 %v210_v37 }
 0x1a8   :  { %v199_v39 = vpop.f32.mrf.mxu1 }
 0x1a9   :  { %v209_v40 = vsel %vm206_vm5, %v199_v39, -inf  ;;  %v222_v44 = vsel %vm432_vm6, %v199_v39, -inf }
 0x1aa   :  { %v319_v41 = vpop.f32.mrf.mxu1  ;;  %v213_v43 = vsel %vm158_vm2, %v209_v40, -inf  ;;  %v226_v45 = vsel %vm158_vm2, %v222_v44, -inf }
 0x1ab   :  { %224 = vmax.xlane.f32.xlu0 %v223_v42  ;;  %214 = vmax.xlane.f32.xlu1 %v213_v43 }
 0x1af   :  { %227 = vmax.xlane.f32.xlu0 %v226_v45 }
 0x230   :  { %v212_v46 = vpop.xlane.xlu0 %211 }
 0x231   :  { %v216_v47 = vsel %vm206_vm5, %v212_v46, 0.0 }
 0x234   :  { %v225_v48 = vpop.xlane.xlu0 %224  ;;  %v215_v50 = vpop.xlane.xlu1 %214 }
 0x235   :  { %v229_v49 = vsel %vm432_vm6, %v225_v48, %v216_v47  ;;  %v217_v53 = vsel %vm206_vm5, %v215_v50, 0.0 }
 0x236   :  { %v231_v51 = vsub.f32 %v196_v33, %v229_v49 }
 0x238   :  { %v233_v52 = vmul.f32 1.442695, %v231_v51  ;;  %v228_v54 = vpop.xlane.xlu0 %227 }
 0x239   :  { %v230_v55 = vsel %vm432_vm6, %v228_v54, %v217_v53 }
 0x23a   :  { %335 = vpow2.f32 %v233_v52  ;;  %v232_v56 = vsub.f32 %v199_v39, %v230_v55 }
 0x23c   :  { %v235_v57 = vmul.f32 1.442695, %v232_v56 }
 0x23e   :  { %337 = vpow2.f32 %v235_v57 }
 0x247   :  { %v336_v58 = vpop.eup %335 }
 0x248   :  { %v237_v59 = vsel %vm206_vm5, %v336_v58, 0.0  ;;  %v247_v61 = vsel %vm432_vm6, %v336_v58, 0.0 }
 0x249   :  { %v239_v60 = vsel %vm158_vm2, %v237_v59, 0.0  ;;  %v249_v0 = vsel %vm158_vm2, %v247_v61, 0.0 }
 0x24a   :  { %240 = vadd.xlane.f32.xlu1 %v239_v60 }
 0x24b   :  { %v338_v62 = vpop.eup %337 }
 0x24c   :  { %v238_v63 = vsel %vm206_vm5, %v338_v62, 0.0  ;;  %v248_v2 = vsel %vm432_vm6, %v338_v62, 0.0 }
 0x24d   :  { %v242_v1 = vsel %vm158_vm2, %v238_v63, 0.0  ;;  %v252_v3 = vsel %vm158_vm2, %v248_v2, 0.0 }
 0x24e   :  { %250 = vadd.xlane.f32.xlu1 %v249_v0  ;;  %243 = vadd.xlane.f32.xlu0 %v242_v1 }
 0x252   :  { %253 = vadd.xlane.f32.xlu0 %v252_v3 }
 0x2d3   :  { %v241_v4 = vpop.xlane.xlu1 %240 }
 0x2d4   :  { %v245_v5 = vsel %vm206_vm5, %v241_v4, 1.0 }
 0x2d7   :  { %v244_v6 = vpop.xlane.xlu0 %243  ;;  %v251_v7 = vpop.xlane.xlu1 %250 }
 0x2d8   :  { %v255_v8 = vsel %vm432_vm6, %v251_v7, %v245_v5  ;;  %v246_v9 = vsel %vm206_vm5, %v244_v6, 1.0 }
 0x2d9   :  { %339 = vlog2.f32 %v255_v8 }
 0x2db   :  { %v254_v10 = vpop.xlane.xlu0 %253 }
 0x2dc   :  { %v256_v11 = vsel %vm432_vm6, %v254_v10, %v246_v9 }
 0x2dd   :  { %341 = vlog2.f32 %v256_v11 }
 0x2e6   :  { %v340_v12 = vpop.eup %339 }
 0x2e7   :  { %v258_v13 = vmul.f32 0.6931472, %v340_v12 }
 0x2e9   :  { %v261_v14 = vsub.f32 %v231_v51, %v258_v13 }
 0x2ea   :  { %v342_v15 = vpop.eup %341 }
 0x2eb   :  { %263 = vst.msk [vmem:[#allocation2] sm:$0xff] %vm158_vm2, %v261_v14  ;;  %v260_v16 = vmul.f32 0.6931472, %v342_v15 }
 0x2ed   :  { %v262_v17 = vsub.f32 %v232_v56, %v260_v16 }
 0x2ef   :  { %264 = vst.msk [vmem:[#allocation2 + $0x8] sm:$0xff] %vm158_vm2, %v262_v17 }
 0x2f0   :  { %354 = shalt.err (!%p351_p4)
}
 0x2f1   :  { %s369_s10 = smov 128   ;;  %s370_s11 = smov 8  }
 0x2f2   :  { %276 = dma.vmem_to_hbm [thread:$0]  %s271_s3, 256, %s477_s4, [#allocation3], %s369_s10, %s369_s10, %s370_s11  }
 0x2f3   :  { %363 = dma.done.wait [#allocation3], 256  }
 0x2f4   :  { %364 = vsyncadd [#allocation3], 4294967040 }
 0x2f5   :  { %280 = vsyncpa [#allocation3], 1 }

</bundles_post_ra>
